<compile_context>
chip_gen: v7x
topology: tpu7x:2x2x1
jax: 0.10.0
libtpu: 0.0.40
codegen_flags: <defaults>
</compile_context>

<pallas_src>
from functools import partial

import jax
import jax.numpy as jnp
from jax.experimental import pallas as pl
from jax.experimental.pallas import tpu as pltpu

LANE = 128      # lane width
SUBLANE = 16    # bf16 sublane packing


def _round_up(x, m):
    return (x + m - 1) // m * m


def _block_diag(blocks):
    """Simple block-diagonal builder (one-time parameter prep only)."""
    total_c = sum(b.shape[1] for b in blocks)
    rows, off = [], 0
    for b in blocks:
        row = jnp.zeros((b.shape[0], total_c), b.dtype)
        row = row.at[:, off:off + b.shape[1]].set(b)
        rows.append(row)
        off += b.shape[1]
    return jnp.concatenate(rows, axis=0)


# ----------------------------- Pallas kernel ------------------------------ #
def _make_kernel(hdim, d_sa_pad, d_emb_pad, H):
    inv_hdim = 1.0 / float(hdim)
    r_w0 = 0
    r_w1q = r_w0 + d_sa_pad
    r_w1e = r_w1q + H
    r_w2 = r_w1e + d_emb_pad
    r_w3 = r_w2 + H

    def kernel(sa_ref, emb_ref, w_ref, seg_ref, b_ref, out_ref):
        sa = sa_ref[...]       # (B_pad, d_sa_pad)  bf16
        emb = emb_ref[...]     # (B_pad, d_emb_pad) bf16

        def elu(x):
            return jnp.where(x > 0, x, jnp.exp(jnp.minimum(x, 0.0)) - 1.0)

        # --- q0 linear (all networks packed along lanes) + AvgL1Norm -------
        q = jnp.dot(sa, w_ref[r_w0:r_w0 + d_sa_pad, :],
                    preferred_element_type=jnp.float32) + b_ref[0:1, :]
        # Segmented |q| sum per network via a block-diagonal ones matmul (f32).
        seg_sum = jnp.dot(jnp.abs(q), seg_ref[...],
                          preferred_element_type=jnp.float32)
        denom = jnp.maximum(seg_sum * inv_hdim, 1e-8)
        q = (q * pl.reciprocal(denom, approx=True)).astype(jnp.bfloat16)

        # --- q1 on cat([q, emb], 1): split matmul over adjacent slab rows ---
        # (K=128 pushes are native on v5e; on v6e/v7x the two slices are
        #  contiguous rows, so a single K=256 contraction is a trivial change.)
        h = (jnp.dot(q, w_ref[r_w1q:r_w1q + H, :],
                     preferred_element_type=jnp.float32)
             + jnp.dot(emb, w_ref[r_w1e:r_w1e + d_emb_pad, :],
                       preferred_element_type=jnp.float32)
             + b_ref[1:2, :])
        h = elu(h)

        # --- q2 (block-diagonal) + ELU --------------------------------------
        h = jnp.dot(h.astype(jnp.bfloat16), w_ref[r_w2:r_w2 + H, :],
                    preferred_element_type=jnp.float32) + b_ref[2:3, :]
        h = elu(h)

        # --- q3: single MXU matmul; network i lands in lane i of the slab ---
        out_ref[...] = (jnp.dot(h.astype(jnp.bfloat16),
                                w_ref[r_w3:r_w3 + H, :],
                                preferred_element_type=jnp.float32)
                        + b_ref[3:4, :])

    return kernel


# ----------------------- one-time parameter packing ------------------------ #
def prepare_params(params):
    """Hoisted out of the hot path: pack / pad / cast weights once."""
    nq, d_sa, hdim = params["w0"].shape
    d_emb = params["w1e"].shape[1]
    H = _round_up(nq * hdim, LANE)
    d_sa_pad = _round_up(d_sa, LANE)
    d_emb_pad = _round_up(d_emb, LANE)

    def pad_to(x, rows, cols):
        return jnp.pad(x, ((0, rows - x.shape[0]), (0, cols - x.shape[1])))

    def pack_cols(w):          # (nq, K, hdim) -> (K, nq*hdim)
        return jnp.swapaxes(w, 0, 1).reshape(w.shape[1], nq * hdim)

    w0 = pad_to(pack_cols(params["w0"]), d_sa_pad, H)
    w1e = pad_to(pack_cols(params["w1e"]), d_emb_pad, H)
    w1q = pad_to(_block_diag([params["w1q"][i] for i in range(nq)]), H, H)
    w2 = pad_to(_block_diag([params["w2"][i] for i in range(nq)]), H, H)
    w3 = pad_to(_block_diag([params["w3"][i] for i in range(nq)]), H, H)

    # One bf16 weight slab: rows [w0; w1q; w1e; w2; w3], all H columns.
    w_slab = jnp.concatenate([w0, w1q, w1e, w2, w3],
                             axis=0).astype(jnp.bfloat16)

    # Segment-sum matrix for AvgL1Norm (kept f32; 0/1 entries).
    seg_mat = pad_to(
        _block_diag([jnp.ones((hdim, hdim), jnp.float32)] * nq), H, H
    ).astype(jnp.float32)

    def pack_bias(b):          # (nq, 1, hdim) -> (1, H)
        return pad_to(b.reshape(1, nq * hdim), 1, H)

    bias = jnp.concatenate(
        [pack_bias(params["b0"]), pack_bias(params["b1"]),
         pack_bias(params["b2"]),
         pad_to(params["b3"].reshape(1, nq), 1, H)],
        axis=0).astype(jnp.float32)                         # (4, H)

    meta = dict(nq=int(nq), hdim=int(hdim), d_sa_pad=int(d_sa_pad),
                d_emb_pad=int(d_emb_pad), H=int(H))
    return w_slab, seg_mat, bias, meta


# ------------------------------ host wrapper ------------------------------ #
@partial(jax.jit, static_argnames=("nq", "hdim", "d_sa_pad", "d_emb_pad", "H"))
def critic_forward(state, action, zsa, zs, w_slab, seg_mat, bias,
                   *, nq, hdim, d_sa_pad, d_emb_pad, H):
    sa = jnp.concatenate([state, action], axis=1)
    emb = jnp.concatenate([zsa, zs], axis=1)
    B = sa.shape[0]
    b_pad = _round_up(max(B, SUBLANE), SUBLANE)

    sa_p = jnp.pad(sa, ((0, b_pad - B), (0, d_sa_pad - sa.shape[1]))
                   ).astype(jnp.bfloat16)
    emb_p = jnp.pad(emb, ((0, b_pad - B), (0, d_emb_pad - emb.shape[1]))
                    ).astype(jnp.bfloat16)

    kernel = _make_kernel(hdim, d_sa_pad, d_emb_pad, H)

    def vmem():
        return pl.BlockSpec(memory_space=pltpu.MemorySpace.VMEM)

    out = pl.pallas_call(
        kernel,
        out_shape=jax.ShapeDtypeStruct((b_pad, H), jnp.float32),
        in_specs=[vmem(), vmem(), vmem(), vmem(), vmem()],
        out_specs=vmem(),
    )(sa_p, emb_p, w_slab, seg_mat, bias)

    # lane-dense (B_pad, H) slab -> (B, nq) == torch.cat(q_values, 1)
    return out[:B, :nq]


# --------------------------- parameter creation ---------------------------- #
def init_params(key, state_dim, action_dim, zs_dim, hdim, nq):
    ks = jax.random.split(key, 8)
    d0 = state_dim + action_dim
    d1 = 2 * zs_dim + hdim

    def u(k, shape, fan_in):
        bound = 1.0 / jnp.sqrt(jnp.float32(fan_in))
        return jax.random.uniform(k, shape, jnp.float32, -bound, bound)

    w1 = u(ks[2], (nq, d1, hdim), d1)  # rows: [hdim (q part) ; 2*zs_dim (emb)]
    return dict(
        w0=u(ks[0], (nq, d0, hdim), d0),
        b0=u(ks[1], (nq, 1, hdim), d0),
        w1q=w1[:, :hdim, :],
        w1e=w1[:, hdim:, :],
        b1=u(ks[3], (nq, 1, hdim), d1),
        w2=u(ks[4], (nq, hdim, hdim), hdim),
        b2=u(ks[5], (nq, 1, hdim), hdim),
        w3=u(ks[6], (nq, hdim, 1), hdim),
        b3=u(ks[7], (nq,), hdim),
    )


# ------------------------------ pure-JAX ref ------------------------------- #
def critic_ref(state, action, zsa, zs, p):
    sa = jnp.concatenate([state, action], 1)
    emb = jnp.concatenate([zsa, zs], 1)
    outs = []
    nq = p["w0"].shape[0]
    for i in range(nq):
        q = sa @ p["w0"][i] + p["b0"][i]
        q = q / jnp.maximum(jnp.mean(jnp.abs(q), -1, keepdims=True), 1e-8)
        qc = jnp.concatenate([q, emb], 1)
        w1 = jnp.concatenate([p["w1q"][i], p["w1e"][i]], 0)
        h = jax.nn.elu(qc @ w1 + p["b1"][i])
        h = jax.nn.elu(h @ p["w2"][i] + p["b2"][i])
        outs.append(h @ p["w3"][i] + p["b3"][i])
    return jnp.concatenate(outs, 1)


if __name__ == "__main__":
    # Small shapes consistent with the module's forward.
    batch, state_dim, action_dim = 4, 17, 6
    zs_dim, hdim, total_q_networks = 32, 32, 2

    key = jax.random.PRNGKey(0)
    k_s, k_a, k_zsa, k_zs, k_p = jax.random.split(key, 5)

    state = jax.random.normal(k_s, (batch, state_dim), jnp.float32)
    action = jax.random.normal(k_a, (batch, action_dim), jnp.float32)
    zsa = jax.random.normal(k_zsa, (batch, zs_dim), jnp.float32)
    zs = jax.random.normal(k_zs, (batch, zs_dim), jnp.float32)

    params = init_params(k_p, state_dim, action_dim, zs_dim, hdim,
                         total_q_networks)

    # One-time (out of the hot path): pack/pad/cast all weights.
    w_slab, seg_mat, bias, meta = prepare_params(params)

    out = jax.block_until_ready(
        critic_forward(state, action, zsa, zs, w_slab, seg_mat, bias, **meta))
    ref = critic_ref(state, action, zsa, zs, params)

    assert out.shape == (batch, total_q_networks), out.shape
    # Tolerance reflects bf16 MXU operands (f32 accumulation) vs the f32 ref.
    assert jnp.allclose(out, ref, atol=5e-2, rtol=5e-2), (out, ref)
    print("KERNEL_OK")
</pallas_src>

<mosaic_0001>
module attributes {stable_mosaic.version = 11 : i64} {
  func.func @kernel(%arg0: memref<16x128xbf16, #tpu.memory_space<vmem>>, %arg1: memref<16x128xbf16, #tpu.memory_space<vmem>>, %arg2: memref<640x128xbf16, #tpu.memory_space<vmem>>, %arg3: memref<128x128xf32, #tpu.memory_space<vmem>>, %arg4: memref<4x128xf32, #tpu.memory_space<vmem>>, %arg5: memref<16x128xf32, #tpu.memory_space<vmem>>) attributes {dimension_semantics = [], scalar_prefetch = 0 : i64, scratch_operands = 0 : i64, tpu.core_type = #tpu.core_type<tc>} {
    %c0 = arith.constant 0 : index
    %c0_0 = arith.constant 0 : index
    %0 = vector.load %arg0[%c0, %c0_0] : memref<16x128xbf16, #tpu.memory_space<vmem>>, vector<16x128xbf16>
    %c0_1 = arith.constant 0 : index
    %c0_2 = arith.constant 0 : index
    %1 = vector.load %arg1[%c0_1, %c0_2] : memref<16x128xbf16, #tpu.memory_space<vmem>>, vector<16x128xbf16>
    %c0_3 = arith.constant 0 : index
    %c0_4 = arith.constant 0 : index
    %2 = vector.load %arg2[%c0_3, %c0_4] : memref<640x128xbf16, #tpu.memory_space<vmem>>, vector<128x128xbf16>
    %cst = arith.constant dense<0.000000e+00> : vector<16x128xf32>
    %3 = tpu.matmul %0, %2, %cst {dimension_numbers = #tpu.dot_dimension_numbers<[1], [0], [0], [1], [0, 0, 1, 1], [], []>} : vector<16x128xbf16>, vector<128x128xbf16>, vector<16x128xf32> -> vector<16x128xf32>
    %c0_5 = arith.constant 0 : index
    %c0_6 = arith.constant 0 : index
    %4 = vector.load %arg4[%c0_5, %c0_6] : memref<4x128xf32, #tpu.memory_space<vmem>>, vector<1x128xf32>
    %5 = vector.broadcast %4 : vector<1x128xf32> to vector<16x128xf32>
    %6 = arith.addf %3, %5 : vector<16x128xf32>
    %7 = math.absf %6 : vector<16x128xf32>
    %c0_7 = arith.constant 0 : index
    %c0_8 = arith.constant 0 : index
    %8 = vector.load %arg3[%c0_7, %c0_8] : memref<128x128xf32, #tpu.memory_space<vmem>>, vector<128x128xf32>
    %cst_9 = arith.constant dense<0.000000e+00> : vector<16x128xf32>
    %9 = tpu.matmul %7, %8, %cst_9 {dimension_numbers = #tpu.dot_dimension_numbers<[1], [0], [0], [1], [0, 0, 1, 1], [], []>} : vector<16x128xf32>, vector<128x128xf32>, vector<16x128xf32> -> vector<16x128xf32>
    %cst_10 = arith.constant 3.125000e-02 : f32
    %10 = vector.broadcast %cst_10 : f32 to vector<16x128xf32>
    %11 = arith.mulf %9, %10 : vector<16x128xf32>
    %cst_11 = arith.constant 9.99999993E-9 : f32
    %12 = vector.broadcast %cst_11 : f32 to vector<16x128xf32>
    %13 = arith.maximumf %11, %12 : vector<16x128xf32>
    %14 = tpu.reciprocal %13 {approx = true} : vector<16x128xf32> -> vector<16x128xf32>
    %15 = arith.mulf %6, %14 : vector<16x128xf32>
    %16 = arith.truncf %15 : vector<16x128xf32> to vector<16x128xbf16>
    %c128 = arith.constant 128 : index
    %c0_12 = arith.constant 0 : index
    %17 = vector.load %arg2[%c128, %c0_12] : memref<640x128xbf16, #tpu.memory_space<vmem>>, vector<128x128xbf16>
    %cst_13 = arith.constant dense<0.000000e+00> : vector<16x128xf32>
    %18 = tpu.matmul %16, %17, %cst_13 {dimension_numbers = #tpu.dot_dimension_numbers<[1], [0], [0], [1], [0, 0, 1, 1], [], []>} : vector<16x128xbf16>, vector<128x128xbf16>, vector<16x128xf32> -> vector<16x128xf32>
    %c256 = arith.constant 256 : index
    %c0_14 = arith.constant 0 : index
    %19 = vector.load %arg2[%c256, %c0_14] : memref<640x128xbf16, #tpu.memory_space<vmem>>, vector<128x128xbf16>
    %cst_15 = arith.constant dense<0.000000e+00> : vector<16x128xf32>
    %20 = tpu.matmul %1, %19, %cst_15 {dimension_numbers = #tpu.dot_dimension_numbers<[1], [0], [0], [1], [0, 0, 1, 1], [], []>} : vector<16x128xbf16>, vector<128x128xbf16>, vector<16x128xf32> -> vector<16x128xf32>
    %21 = arith.addf %18, %20 : vector<16x128xf32>
    %c1 = arith.constant 1 : index
    %c0_16 = arith.constant 0 : index
    %22 = vector.load %arg4[%c1, %c0_16] : memref<4x128xf32, #tpu.memory_space<vmem>>, vector<1x128xf32>
    %23 = vector.broadcast %22 : vector<1x128xf32> to vector<16x128xf32>
    %24 = arith.addf %21, %23 : vector<16x128xf32>
    %cst_17 = arith.constant 0.000000e+00 : f32
    %25 = vector.broadcast %cst_17 : f32 to vector<16x128xf32>
    %26 = arith.cmpf ogt, %24, %25 : vector<16x128xf32>
    %cst_18 = arith.constant 0.000000e+00 : f32
    %27 = vector.broadcast %cst_18 : f32 to vector<16x128xf32>
    %28 = arith.minimumf %24, %27 : vector<16x128xf32>
    %29 = math.exp %28 : vector<16x128xf32>
    %cst_19 = arith.constant 1.000000e+00 : f32
    %30 = vector.broadcast %cst_19 : f32 to vector<16x128xf32>
    %31 = arith.subf %29, %30 : vector<16x128xf32>
    %32 = arith.select %26, %24, %31 : vector<16x128xi1>, vector<16x128xf32>
    %33 = arith.truncf %32 : vector<16x128xf32> to vector<16x128xbf16>
    %c384 = arith.constant 384 : index
    %c0_20 = arith.constant 0 : index
    %34 = vector.load %arg2[%c384, %c0_20] : memref<640x128xbf16, #tpu.memory_space<vmem>>, vector<128x128xbf16>
    %cst_21 = arith.constant dense<0.000000e+00> : vector<16x128xf32>
    %35 = tpu.matmul %33, %34, %cst_21 {dimension_numbers = #tpu.dot_dimension_numbers<[1], [0], [0], [1], [0, 0, 1, 1], [], []>} : vector<16x128xbf16>, vector<128x128xbf16>, vector<16x128xf32> -> vector<16x128xf32>
    %c2 = arith.constant 2 : index
    %c0_22 = arith.constant 0 : index
    %36 = vector.load %arg4[%c2, %c0_22] : memref<4x128xf32, #tpu.memory_space<vmem>>, vector<1x128xf32>
    %37 = vector.broadcast %36 : vector<1x128xf32> to vector<16x128xf32>
    %38 = arith.addf %35, %37 : vector<16x128xf32>
    %cst_23 = arith.constant 0.000000e+00 : f32
    %39 = vector.broadcast %cst_23 : f32 to vector<16x128xf32>
    %40 = arith.cmpf ogt, %38, %39 : vector<16x128xf32>
    %cst_24 = arith.constant 0.000000e+00 : f32
    %41 = vector.broadcast %cst_24 : f32 to vector<16x128xf32>
    %42 = arith.minimumf %38, %41 : vector<16x128xf32>
    %43 = math.exp %42 : vector<16x128xf32>
    %cst_25 = arith.constant 1.000000e+00 : f32
    %44 = vector.broadcast %cst_25 : f32 to vector<16x128xf32>
    %45 = arith.subf %43, %44 : vector<16x128xf32>
    %46 = arith.select %40, %38, %45 : vector<16x128xi1>, vector<16x128xf32>
    %47 = arith.truncf %46 : vector<16x128xf32> to vector<16x128xbf16>
    %c512 = arith.constant 512 : index
    %c0_26 = arith.constant 0 : index
    %48 = vector.load %arg2[%c512, %c0_26] : memref<640x128xbf16, #tpu.memory_space<vmem>>, vector<128x128xbf16>
    %cst_27 = arith.constant dense<0.000000e+00> : vector<16x128xf32>
    %49 = tpu.matmul %47, %48, %cst_27 {dimension_numbers = #tpu.dot_dimension_numbers<[1], [0], [0], [1], [0, 0, 1, 1], [], []>} : vector<16x128xbf16>, vector<128x128xbf16>, vector<16x128xf32> -> vector<16x128xf32>
    %c3 = arith.constant 3 : index
    %c0_28 = arith.constant 0 : index
    %50 = vector.load %arg4[%c3, %c0_28] : memref<4x128xf32, #tpu.memory_space<vmem>>, vector<1x128xf32>
    %51 = vector.broadcast %50 : vector<1x128xf32> to vector<16x128xf32>
    %52 = arith.addf %49, %51 : vector<16x128xf32>
    %c0_29 = arith.constant 0 : index
    %c0_30 = arith.constant 0 : index
    %53 = vector.load %arg5[%c0_29, %c0_30] : memref<16x128xf32, #tpu.memory_space<vmem>>, vector<16x128xf32>
    tpu.vector_store %arg5[%c0_29, %c0_30], %52 {strides = array<i32>} : memref<16x128xf32, #tpu.memory_space<vmem>>, vector<16x128xf32>,
    return
  }
}

</mosaic_0001>

<bundles_post_ra>
// kernel: critic_forward.1
= control target key start
LH: loop header
LB: loop body
LE: loop exit
PB: predicated region body
PF: predicated region fallthrough
CT: control target
= control target key end

     0   :  { %10 = vsyncpa [#allocation3], 0  ;;  %s1278_s0 = inlined_call_operand.vmem [shape: bf16[16,128], index: 0, kind: input, shape index: {}]   ;;  %s1279_s1 = inlined_call_operand.vmem [shape: bf16[16,128], index: 1, kind: input, shape index: {}]   ;;  %s1280_s2 = inlined_call_operand.hbm [shape: bf16[640,128], index: 2, kind: input, shape index: {}]   ;;  %s1281_s3 = inlined_call_operand.hbm [shape: f32[128,128], index: 3, kind: input, shape index: {}]   ;;  %s1282_s4 = inlined_call_operand.vmem [shape: f32[4,128], index: 4, kind: input, shape index: {}]   ;;  %s1283_s5 = inlined_call_operand.vmem [shape: f32[16,128], index: 5, kind: output, shape index: {}]  }
   0x1   :  { %11 = vsyncpa [#allocation5], 0  ;;  %s1138_s18 = smov [#allocation2]   ;;  %s1090_s22 = scalar_lea.hbm %s1280_s2, 5120 }
   0x2   :  { %s21_s19 = sshll.u32 %s1138_s18, 4  ;;  %p1091_p0 = scmp.ne.s32.totalorder %s1280_s2, %s1090_s22  ;;  %s22_s19 = int_to_ptr.vmem [resolvable:$true] %s21_s19 }
   0x3   :  { %p1094_p1 = scmp.lt.u32.totalorder %s1090_s22, %s1280_s2 }
   0x5   :  { %p1096_p2 = pnand %p1094_p1, %p1091_p0 }
   0x7   :  { %1099 = shalt.err (!%p1096_p2)
}
   0x8   :  { %s1100_s27 = scalar_lea.vmem %s22_s19, 5120  ;;  %p1105_p4 = scmp.lt.s32.totalorder %s22_s19, %s22_s19 }
   0x9   :  { %p1101_p3 = scmp.ne.s32.totalorder %s22_s19, %s1100_s27  ;;  %p1106_p5 = scmp.lt.s32.totalorder %s1100_s27, %s1100_s27 }
   0xb   :  { %p1107_p6 = por %p1106_p5, %p1105_p4 }
   0xd   :  { %p1108_p7 = pnand %p1107_p6, %p1101_p3 }
   0xf   :  { %1111 = shalt.err (!%p1108_p7)
}
  0x10   :  { %s1139_s28 = smov 64   ;;  %s1140_s29 = smov 4  }
  0x11   :  { %27 = dma.hbm_to_vmem [thread:$0]  %s1280_s2, 5120, %s22_s19, [#allocation3], %s1139_s28, %s1139_s28, %s1140_s29  }
  0x12   :  { %s1141_s7 = smov [#allocation4]   ;;  %s1112_s11 = scalar_lea.hbm %s1281_s3, 2048 }
  0x13   :  { %s33_s8 = sshll.u32 %s1141_s7, 4  ;;  %p1113_p8 = scmp.ne.s32.totalorder %s1281_s3, %s1112_s11  ;;  %s34_s8 = int_to_ptr.vmem [resolvable:$true] %s33_s8 }
  0x14   :  { %p1116_p9 = scmp.lt.u32.totalorder %s1112_s11, %s1281_s3 }
  0x16   :  { %p1118_p10 = pnand %p1116_p9, %p1113_p8 }
  0x18   :  { %1121 = shalt.err (!%p1118_p10)
}
  0x19   :  { %s1122_s16 = scalar_lea.vmem %s34_s8, 2048  ;;  %p1127_p12 = scmp.lt.s32.totalorder %s34_s8, %s34_s8 }
  0x1a   :  { %p1123_p11 = scmp.ne.s32.totalorder %s34_s8, %s1122_s16  ;;  %p1128_p13 = scmp.lt.s32.totalorder %s1122_s16, %s1122_s16 }
  0x1c   :  { %p1129_p0 = por %p1128_p13, %p1127_p12 }
  0x1e   :  { %p1130_p1 = pnand %p1129_p0, %p1123_p11 }
  0x20   :  { %1133 = shalt.err (!%p1130_p1)
}
  0x21   :  { %s1142_s2 = smov 128   ;;  %s1143_s17 = smov 8  }
  0x22   :  { %39 = dma.hbm_to_vmem [thread:$0]  %s1281_s3, 2048, %s34_s8, [#allocation5], %s1142_s2, %s1142_s2, %s1143_s17  }
  0x23   :  { %1134 = dma.done.wait [#allocation3], 5120  }
  0x24   :  { %1135 = vsyncadd [#allocation3], 4294962176 }
  0x25   :  { %1136 = dma.done.wait [#allocation5], 2048  }
  0x26   :  { %1137 = vsyncadd [#allocation5], 4294965248  ;;  %v1144_v0 = vmov 0.0   ;;  %vm1145_vm0 = vmmov 0   ;;  %v1036_v1 = vld [vmem:[#allocation2] sm:$0xff]   ;;  %v1037_v2 = vld [vmem:[#allocation2 + $0x8] sm:$0xff]  }
  0x27   :  { %861 = vmatprep.subr.bf16.mxu0 %v1144_v0  ;;  %877 = vmatprep.mubr.msk.bf16.mxu0 %vm1145_vm0, %v1144_v0  ;;  %v1038_v3 = vld [vmem:[#allocation2 + $0x10] sm:$0xff]   ;;  %v171_v4 = vld [vmem:[#allocation4] sm:$0xff]  ;;  %v172_v5 = vld [vmem:[#allocation4 + $0x8] sm:$0xff] }
  0x28   :  { %862 = vmatpush3.bf16.msra.mxu0 %v1036_v1  ;;  %v173_v6 = vld [vmem:[#allocation4 + $0x10] sm:$0xff]  ;;  %v1039_v7 = vld [vmem:[#allocation2 + $0x18] sm:$0xff]   ;;  %v996_v8 = vpack.c.bf16 %v172_v5, %v171_v4  ;;  %v175_v11 = vld [vmem:[#allocation4 + $0x20] sm:$0xff] }
  0x29   :  { %863 = vmatprep.subr.bf16.mxu0 %v1144_v0  ;;  %v174_v9 = vld [vmem:[#allocation4 + $0x18] sm:$0xff]  ;;  %v176_v12 = vld [vmem:[#allocation4 + $0x28] sm:$0xff]  ;;  %v1040_v13 = vld [vmem:[#allocation2 + $0x20] sm:$0xff]  }
  0x2a   :  { %v1000_v10 = vpack.c.bf16 %v174_v9, %v173_v6  ;;  %997 = vmatprep.subr.bf16.mxu1 %v996_v8  ;;  %v177_v14 = vld [vmem:[#allocation4 + $0x30] sm:$0xff]  ;;  %v178_v15 = vld [vmem:[#allocation4 + $0x38] sm:$0xff]  ;;  %v1004_v16 = vpack.c.bf16 %v176_v12, %v175_v11  ;;  %v1041_v17 = vld [vmem:[#allocation2 + $0x28] sm:$0xff]  }
  0x2b   :  { %999 = vmatpush3.bf16.msra.mxu1 %v996_v8  ;;  %v179_v18 = vld [vmem:[#allocation4 + $0x40] sm:$0xff]  ;;  %v180_v19 = vld [vmem:[#allocation4 + $0x48] sm:$0xff]  ;;  %v1008_v20 = vpack.c.bf16 %v178_v15, %v177_v14  ;;  %v1042_v21 = vld [vmem:[#allocation2 + $0x30] sm:$0xff]  }
  0x2c   :  { %864 = vmatpush3.bf16.msra.mxu0 %v1037_v2  ;;  %1001 = vmatprep.subr.bf16.mxu1 %v1000_v10  ;;  %v181_v22 = vld [vmem:[#allocation4 + $0x50] sm:$0xff]  ;;  %v182_v23 = vld [vmem:[#allocation4 + $0x58] sm:$0xff]  ;;  %v1012_v24 = vpack.c.bf16 %v180_v19, %v179_v18  ;;  %v183_v26 = vld [vmem:[#allocation4 + $0x60] sm:$0xff] }
  0x2d   :  { %865 = vmatprep.subr.bf16.mxu0 %v1144_v0  ;;  %v1043_v25 = vld [vmem:[#allocation2 + $0x38] sm:$0xff]   ;;  %v184_v27 = vld [vmem:[#allocation4 + $0x68] sm:$0xff]  ;;  %v1016_v28 = vpack.c.bf16 %v182_v23, %v181_v22  ;;  %v1044_v29 = vld [vmem:[%s1278_s0] sm:$0xff]  }
  0x2e   :  { %v1020_v30 = vpack.c.bf16 %v184_v27, %v183_v26  ;;  %v185_v31 = vld [vmem:[#allocation4 + $0x70] sm:$0xff]  ;;  %v186_v32 = vld [vmem:[#allocation4 + $0x78] sm:$0xff]  ;;  %v1045_v34 = vld [vmem:[#allocation2 + $0x80] sm:$0xff]  }
  0x2f   :  { %1003 = vmatpush3.bf16.msra.mxu1 %v1000_v10  ;;  %v1024_v33 = vpack.c.bf16 %v186_v32, %v185_v31  ;;  %v1047_v35 = vld [vmem:[#allocation2 + $0x88] sm:$0xff]   ;;  %v1049_v36 = vld [vmem:[#allocation2 + $0x90] sm:$0xff]   ;;  %v1051_v37 = vld [vmem:[#allocation2 + $0x98] sm:$0xff]  }
  0x30   :  { %866 = vmatpush3.bf16.msra.mxu0 %v1038_v3  ;;  %1005 = vmatprep.subr.bf16.mxu1 %v1004_v16  ;;  %v748_v38 = vld [vmem:[%s1282_s4] ss:$0 sm:$0xff]  ;;  %v1048_v48 = vld [vmem:[#allocation2 + $0x48] sm:$0xff]   ;;  %v1050_v49 = vld [vmem:[#allocation2 + $0x50] sm:$0xff]  }
  0x31   :  { %867 = vmatprep.subr.bf16.mxu0 %v1144_v0  ;;  %v1046_v46 = vld [vmem:[#allocation2 + $0x40] sm:$0xff]   ;;  %v1052_v50 = vld [vmem:[#allocation2 + $0x58] sm:$0xff]   ;;  %v1055_v53 = vld [vmem:[#allocation2 + $0xa8] sm:$0xff]  }
  0x32   :  { %v1053_v51 = vld [vmem:[#allocation2 + $0xa0] sm:$0xff]   ;;  %v1056_v54 = vld [vmem:[#allocation2 + $0x68] sm:$0xff]   ;;  %v1057_v55 = vld [vmem:[#allocation2 + $0xb0] sm:$0xff]  }
  0x33   :  { %1007 = vmatpush3.bf16.msra.mxu1 %v1004_v16  ;;  %v1054_v52 = vld [vmem:[#allocation2 + $0x60] sm:$0xff]   ;;  %v1058_v56 = vld [vmem:[#allocation2 + $0x70] sm:$0xff]   ;;  %v1059_v57 = vld [vmem:[#allocation2 + $0xb8] sm:$0xff]  }
  0x34   :  { %868 = vmatpush3.bf16.msra.mxu0 %v1039_v7  ;;  %1009 = vmatprep.subr.bf16.mxu1 %v1008_v20  ;;  %v1060_v58 = vld [vmem:[%s1279_s1] sm:$0xff]   ;;  %v1061_v59 = vld [vmem:[#allocation2 + $0x78] sm:$0xff]   ;;  %v1063_v11 = vld [vmem:[#allocation2 + $0xc8] sm:$0xff]  }
  0x35   :  { %869 = vmatprep.subr.bf16.mxu0 %v1144_v0  ;;  %v1062_v60 = vld [vmem:[#allocation2 + $0xc0] sm:$0xff]   ;;  %v1064_v14 = vld [vmem:[#allocation2 + $0xd0] sm:$0xff]   ;;  %v1065_v15 = vld [vmem:[#allocation2 + $0xd8] sm:$0xff]  }
  0x36   :  { %v1066_v16 = vld [vmem:[#allocation2 + $0xe0] sm:$0xff]   ;;  %v1068_v18 = vld [vmem:[#allocation2 + $0xf0] sm:$0xff]   ;;  %v1069_v19 = vld [vmem:[#allocation2 + $0xf8] sm:$0xff]  }
  0x37   :  { %1011 = vmatpush3.bf16.msra.mxu1 %v1008_v20  ;;  %v1070_v20 = vld [vmem:[#allocation2 + $0x100] sm:$0xff]  }
  0x38   :  { %870 = vmatpush3.bf16.msra.mxu0 %v1040_v13  ;;  %1013 = vmatprep.subr.bf16.mxu1 %v1012_v24  ;;  %v775_v23 = vld [vmem:[%s1282_s4 + $0x1] ss:$0 sm:$0xff] }
  0x39   :  { %871 = vmatprep.subr.bf16.mxu0 %v1144_v0 }
  0x3b   :  { %1015 = vmatpush3.bf16.msra.mxu1 %v1012_v24 }
  0x3c   :  { %872 = vmatpush3.bf16.msra.mxu0 %v1041_v17  ;;  %1017 = vmatprep.subr.bf16.mxu1 %v1016_v28  ;;  %v1067_v17 = vld [vmem:[#allocation2 + $0xe8] sm:$0xff]  }
  0x3d   :  { %873 = vmatprep.subr.bf16.mxu0 %v1144_v0 }
  0x3f   :  { %1019 = vmatpush3.bf16.msra.mxu1 %v1016_v28 }
  0x40   :  { %874 = vmatpush3.bf16.msra.mxu0 %v1042_v21  ;;  %1021 = vmatprep.subr.bf16.mxu1 %v1020_v30  ;;  %v1071_v21 = vld [vmem:[#allocation2 + $0x108] sm:$0xff]  }
  0x41   :  { %875 = vmatprep.subr.bf16.mxu0 %v1144_v0 }
  0x43   :  { %1023 = vmatpush3.bf16.msra.mxu1 %v1020_v30 }
  0x44   :  { %876 = vmatpush3.bf16.msra.mxu0 %v1043_v25  ;;  %1025 = vmatprep.subr.bf16.mxu1 %v1024_v33 }
  0x45   :  { %916 = vmatprep.subr.bf16.mxu0 %v1144_v0 }
  0x47   :  { %878 = vmatmul.mubr.bf16.vlgmr.msra.gmra.mrb[0].mxu0 %v1044_v29  ;;  %1027 = vmatpush3.bf16.msra.mxu1 %v1024_v33 }
  0x48   :  { %932 = vmatprep.mubr.msk.bf16.mxu0 %vm1145_vm0, %v1144_v0  ;;  %936 = vmatprep.subr.bf16.mxu1 %v1144_v0 }
  0x49   :  { %917 = vmatpush3.bf16.msra.mxu0 %v1045_v34 }
  0x4a   :  { %918 = vmatprep.subr.bf16.mxu0 %v1144_v0 }
  0x4d   :  { %919 = vmatpush3.bf16.msra.mxu0 %v1047_v35 }
  0x4e   :  { %920 = vmatprep.subr.bf16.mxu0 %v1144_v0 }
  0x51   :  { %921 = vmatpush3.bf16.msra.mxu0 %v1049_v36 }
  0x52   :  { %922 = vmatprep.subr.bf16.mxu0 %v1144_v0 }
  0x55   :  { %923 = vmatpush3.bf16.msra.mxu0 %v1051_v37 }
  0x56   :  { %924 = vmatprep.subr.bf16.mxu0 %v1144_v0 }
  0x59   :  { %925 = vmatpush3.bf16.msra.mxu0 %v1053_v51 }
  0x5a   :  { %926 = vmatprep.subr.bf16.mxu0 %v1144_v0 }
  0x5d   :  { %927 = vmatpush3.bf16.msra.mxu0 %v1055_v53 }
  0x5e   :  { %928 = vmatprep.subr.bf16.mxu0 %v1144_v0 }
  0x61   :  { %929 = vmatpush3.bf16.msra.mxu0 %v1057_v55 }
  0x62   :  { %930 = vmatprep.subr.bf16.mxu0 %v1144_v0 }
  0x65   :  { %931 = vmatpush3.bf16.msra.mxu0 %v1059_v57 }
  0x66   :  { %956 = vmatprep.subr.bf16.mxu0 %v1144_v0 }
  0x68   :  { %933 = vmatmul.mubr.bf16.vlgmr.msra.gmra.mrb[4].mxu0 %v1060_v58 }
  0x69   :  { %972 = vmatprep.mubr.msk.bf16.mxu0 %vm1145_vm0, %v1144_v0  ;;  %957 = vmatpush3.bf16.msra.mxu0 %v1062_v60 }
  0x6a   :  { %958 = vmatprep.subr.bf16.mxu0 %v1144_v0 }
  0x6d   :  { %959 = vmatpush3.bf16.msra.mxu0 %v1063_v11 }
  0x6e   :  { %960 = vmatprep.subr.bf16.mxu0 %v1144_v0 }
  0x71   :  { %961 = vmatpush3.bf16.msra.mxu0 %v1064_v14 }
  0x72   :  { %962 = vmatprep.subr.bf16.mxu0 %v1144_v0 }
  0x75   :  { %963 = vmatpush3.bf16.msra.mxu0 %v1065_v15 }
  0x76   :  { %964 = vmatprep.subr.bf16.mxu0 %v1144_v0 }
  0x79   :  { %965 = vmatpush3.bf16.msra.mxu0 %v1066_v16 }
  0x7a   :  { %966 = vmatprep.subr.bf16.mxu0 %v1144_v0 }
  0x7d   :  { %967 = vmatpush3.bf16.msra.mxu0 %v1067_v17 }
  0x7e   :  { %968 = vmatprep.subr.bf16.mxu0 %v1144_v0 }
  0x81   :  { %969 = vmatpush3.bf16.msra.mxu0 %v1068_v18 }
  0x82   :  { %970 = vmatprep.subr.bf16.mxu0 %v1144_v0 }
  0x85   :  { %971 = vmatpush3.bf16.msra.mxu0 %v1069_v19 }
 0x11a   :  { %v162_v39 = vpop.f32.mrb[0].mxu0 }
 0x11b   :  { %v1224_v40 = vadd.f32 %v748_v38, %v162_v39  ;;  %v879_v41 = vpop.f32.mrb[1].mxu0 }
 0x11c   :  { %v165_v42 = vpop.f32.mrb[2].mxu0 }
 0x11d   :  { %v166_v43 = vadd.f32 %v748_v38, %v165_v42  ;;  %v880_v44 = vpop.f32.mrb[3].mxu0  ;;  %v169_v45 = vand.u32 2147483647, %v1224_v40  ;;  %v1072_v42 = vld [vmem:[#allocation2 + $0x110] sm:$0xff]  }
 0x11e   :  { %v1074_v44 = vld [vmem:[#allocation2 + $0x120] sm:$0xff]  }
 0x11f   :  { %v170_v47 = vand.u32 2147483647, %v166_v43  ;;  %913 = vmatprep.mubr.f32.mxu1 %v169_v45  ;;  %v1075_v45 = vld [vmem:[#allocation2 + $0x128] sm:$0xff]  }
 0x121   :  { %914 = vmatmul.mubr.f32.vlgmr.msra.gmra.mrb[0].mxu1 %v170_v47  ;;  %v1077_v47 = vld [vmem:[#allocation2 + $0x138] sm:$0xff]  }
 0x122   :  { %937 = vmatpush3.bf16.msra.mxu1 %v1046_v46  ;;  %952 = vmatprep.mubr.msk.bf16.mxu1 %vm1145_vm0, %v1144_v0  ;;  %v1076_v46 = vld [vmem:[#allocation2 + $0x130] sm:$0xff]  }
 0x123   :  { %938 = vmatprep.subr.bf16.mxu1 %v1144_v0 }
 0x126   :  { %939 = vmatpush3.bf16.msra.mxu1 %v1048_v48  ;;  %v778_v48 = vld [vmem:[%s1282_s4 + $0x2] ss:$0 sm:$0xff] }
 0x127   :  { %940 = vmatprep.subr.bf16.mxu1 %v1144_v0 }
 0x12a   :  { %941 = vmatpush3.bf16.msra.mxu1 %v1050_v49 }
 0x12b   :  { %942 = vmatprep.subr.bf16.mxu1 %v1144_v0 }
 0x12e   :  { %943 = vmatpush3.bf16.msra.mxu1 %v1052_v50 }
 0x12f   :  { %944 = vmatprep.subr.bf16.mxu1 %v1144_v0 }
 0x132   :  { %945 = vmatpush3.bf16.msra.mxu1 %v1054_v52 }
 0x133   :  { %946 = vmatprep.subr.bf16.mxu1 %v1144_v0 }
 0x136   :  { %947 = vmatpush3.bf16.msra.mxu1 %v1056_v54 }
 0x137   :  { %948 = vmatprep.subr.bf16.mxu1 %v1144_v0 }
 0x13a   :  { %949 = vmatpush3.bf16.msra.mxu1 %v1058_v56 }
 0x13b   :  { %950 = vmatprep.subr.bf16.mxu1 %v1144_v0  ;;  %v391_v9 = vpop.f32.mrb[4].mxu0 }
 0x13c   :  { %v934_v10 = vpop.f32.mrb[5].mxu0 }
 0x13d   :  { %v394_v12 = vpop.f32.mrb[6].mxu0 }
 0x13e   :  { %951 = vmatpush3.bf16.msra.mxu1 %v1061_v59  ;;  %v935_v13 = vpop.f32.mrb[7].mxu0 }
 0x13f   :  { %976 = vmatprep.subr.bf16.mxu1 %v1144_v0 }
 0x1f4   :  { %v915_v61 = vpop.f32.mrb[0].mxu1 }
 0x1f5   :  { %v263_v62 = vmul.f32 0.03125, %v915_v61  ;;  %v253_v63 = vpop.f32.mrb[1].mxu1 }
 0x1f6   :  { %v262_v1 = vmul.f32 0.03125, %v253_v63 }
 0x1f7   :  { %v265_v2 = vmax.f32 %v263_v62, 1e-08 }
 0x1f8   :  { %v264_v3 = vmax.f32 %v262_v1, 1e-08 }
 0x1f9   :  { %1078 = vrcp.f32 %v265_v2  ;;  %v789_v2 = vld [vmem:[%s1282_s4 + $0x3] ss:$0 sm:$0xff] }
 0x1fa   :  { %1080 = vrcp.f32 %v264_v3 }
 0x203   :  { %v1079_v4 = vpop.eup %1078 }
 0x204   :  { %v1081_v5 = vpop.eup %1080  ;;  %v269_v6 = vmul.f32 %v1079_v4, %v166_v43  ;;  %v1073_v43 = vld [vmem:[#allocation2 + $0x118] sm:$0xff]  }
 0x205   :  { %v268_v7 = vmul.f32 %v1081_v5, %v1224_v40 }
 0x207   :  { %v270_v8 = vpack.c.bf16 %v269_v6, %v268_v7 }
 0x209   :  { %953 = vmatmul.mubr.bf16.vlgmr.msra.gmra.mrb[4].mxu1 %v270_v8 }
 0x20a   :  { %992 = vmatprep.mubr.msk.bf16.mxu1 %vm1145_vm0, %v1144_v0  ;;  %977 = vmatpush3.bf16.msra.mxu1 %v1070_v20 }
 0x20b   :  { %978 = vmatprep.subr.bf16.mxu1 %v1144_v0 }
 0x20e   :  { %979 = vmatpush3.bf16.msra.mxu1 %v1071_v21 }
 0x20f   :  { %980 = vmatprep.subr.bf16.mxu1 %v1144_v0 }
 0x212   :  { %981 = vmatpush3.bf16.msra.mxu1 %v1072_v42 }
 0x213   :  { %982 = vmatprep.subr.bf16.mxu1 %v1144_v0 }
 0x216   :  { %983 = vmatpush3.bf16.msra.mxu1 %v1073_v43 }
 0x217   :  { %984 = vmatprep.subr.bf16.mxu1 %v1144_v0 }
 0x21a   :  { %985 = vmatpush3.bf16.msra.mxu1 %v1074_v44 }
 0x21b   :  { %986 = vmatprep.subr.bf16.mxu1 %v1144_v0 }
 0x21e   :  { %987 = vmatpush3.bf16.msra.mxu1 %v1075_v45 }
 0x21f   :  { %988 = vmatprep.subr.bf16.mxu1 %v1144_v0 }
 0x222   :  { %989 = vmatpush3.bf16.msra.mxu1 %v1076_v46 }
 0x223   :  { %990 = vmatprep.subr.bf16.mxu1 %v1144_v0 }
 0x226   :  { %991 = vmatpush3.bf16.msra.mxu1 %v1077_v47 }
 0x2dc   :  { %v480_v22 = vpop.f32.mrb[4].mxu1 }
 0x2dd   :  { %v481_v24 = vadd.f32 %v480_v22, %v391_v9  ;;  %v954_v25 = vpop.f32.mrb[5].mxu1 }
 0x2de   :  { %v483_v26 = vpop.f32.mrb[6].mxu1 }
 0x2df   :  { %v492_v27 = vadd.f32 %v775_v23, %v481_v24  ;;  %v484_v28 = vadd.f32 %v483_v26, %v394_v12  ;;  %v955_v29 = vpop.f32.mrb[7].mxu1 }
 0x2e1   :  { %v496_v30 = vmin.f32 %v492_v27, 0.0  ;;  %v493_v31 = vadd.f32 %v775_v23, %v484_v28  ;;  %vm494_vm1 = vcmp.gt.f32.partialorder %v492_v27, 0.0 }
 0x2e3   :  { %v498_v32 = vmul.f32 1.442695, %v496_v30  ;;  %v497_v33 = vmin.f32 %v493_v31, 0.0  ;;  %vm495_vm2 = vcmp.gt.f32.partialorder %v493_v31, 0.0 }
 0x2e5   :  { %1082 = vpow2.f32 %v498_v32  ;;  %v500_v34 = vmul.f32 1.442695, %v497_v33 }
 0x2e7   :  { %1084 = vpow2.f32 %v500_v34 }
 0x2ef   :  { %v1083_v35 = vpop.eup %1082 }
 0x2f0   :  { %v776_v36 = vadd.f32 -1.0, %v1083_v35 }
 0x2f1   :  { %v1085_v37 = vpop.eup %1084 }
 0x2f2   :  { %v777_v38 = vadd.f32 -1.0, %v1085_v37  ;;  %v504_v39 = vsel %vm494_vm1, %v492_v27, %v776_v36 }
 0x2f4   :  { %v505_v40 = vsel %vm495_vm2, %v493_v31, %v777_v38 }
 0x2f5   :  { %v506_v41 = vpack.c.bf16 %v505_v40, %v504_v39 }
 0x2f7   :  { %973 = vmatmul.mubr.bf16.vlgmr.msra.gmra.mrb[8].mxu0 %v506_v41 }
 0x3ca   :  { %v610_v49 = vpop.f32.mrb[8].mxu0 }
 0x3cb   :  { %v611_v50 = vadd.f32 %v778_v48, %v610_v49  ;;  %v974_v51 = vpop.f32.mrb[9].mxu0 }
 0x3cc   :  { %v613_v52 = vpop.f32.mrb[10].mxu0 }
 0x3cd   :  { %v619_v53 = vmin.f32 %v611_v50, 0.0  ;;  %v614_v54 = vadd.f32 %v778_v48, %v613_v52  ;;  %v975_v55 = vpop.f32.mrb[11].mxu0  ;;  %vm617_vm3 = vcmp.gt.f32.partialorder %v611_v50, 0.0 }
 0x3cf   :  { %v621_v56 = vmul.f32 1.442695, %v619_v53  ;;  %v620_v57 = vmin.f32 %v614_v54, 0.0  ;;  %vm618_vm4 = vcmp.gt.f32.partialorder %v614_v54, 0.0 }
 0x3d1   :  { %1086 = vpow2.f32 %v621_v56  ;;  %v623_v58 = vmul.f32 1.442695, %v620_v57 }
 0x3d3   :  { %1088 = vpow2.f32 %v623_v58 }
 0x3db   :  { %v1087_v59 = vpop.eup %1086 }
 0x3dc   :  { %v787_v0 = vadd.f32 -1.0, %v1087_v59 }
 0x3dd   :  { %v1089_v60 = vpop.eup %1088 }
 0x3de   :  { %v788_v61 = vadd.f32 -1.0, %v1089_v60  ;;  %v627_v62 = vsel %vm617_vm3, %v611_v50, %v787_v0 }
 0x3e0   :  { %v628_v63 = vsel %vm618_vm4, %v614_v54, %v788_v61 }
 0x3e1   :  { %v629_v1 = vpack.c.bf16 %v628_v63, %v627_v62 }
 0x3e3   :  { %993 = vmatmul.mubr.bf16.vlgmr.msra.gmra.mrb[8].mxu1 %v629_v1 }
 0x4b6   :  { %v733_v3 = vpop.f32.mrb[8].mxu1 }
 0x4b7   :  { %v734_v4 = vadd.f32 %v789_v2, %v733_v3  ;;  %v994_v5 = vpop.f32.mrb[9].mxu1 }
 0x4b8   :  { %v736_v6 = vpop.f32.mrb[10].mxu1 }
 0x4b9   :  { %740 = vst [vmem:[%s1283_s5] sm:$0xff] %v734_v4  ;;  %v737_v7 = vadd.f32 %v789_v2, %v736_v6  ;;  %v995_v8 = vpop.f32.mrb[11].mxu1 }
 0x4bb   :  { %741 = vst [vmem:[%s1283_s5 + $0x8] sm:$0xff] %v737_v7 }
 0x4bc   :  { %746 = vsyncpa [#allocation3], 1 }
 0x4bd   :  { %747 = vsyncpa [#allocation5], 1 }

</bundles_post_ra>
